<compile_context>
chip_gen: v6e
topology: v6e:2x2x1
jax: 0.10.0
libtpu: 0.0.40
codegen_flags: <defaults>
</compile_context>

<pallas_src>
import functools
import math

import jax
import jax.numpy as jnp
import numpy as np
from jax import lax
from jax.experimental import pallas as pl
from jax.experimental.pallas import tpu as pltpu


def _cur_attention_kernel(mbias_ref, q_ref, k_ref, v_ref, nc_ref, nr_ref,
                          vmt_ref, o_ref, *, scale):
    """Per-batch step: all H heads, lane-dense (last dim = N) intermediates."""
    H = q_ref.shape[1]
    bias = mbias_ref[0]                                  # (1, N) f32, 0 / -1e30

    dot32 = functools.partial(lax.dot_general,
                              preferred_element_type=jnp.float32)
    c_D = (((1,), (1,)), ((), ()))                       # contract over D ("@ x^T")

    # Static Python loop: H is small and known at trace time; every ref index
    # below is a concrete int, which is the most robust Mosaic lowering path.
    for h in range(H):
        q = q_ref[0, h]                                  # (N, D)  compute dtype
        k = k_ref[0, h]                                  # (N, D)
        v = v_ref[0, h]                                  # (N, D)
        nc = nc_ref[0, h]                                # (M, D)  selected K rows
        nr = nr_ref[0, h]                                # (M, D)  selected Q rows (unscaled)
        vmt = vmt_ref[0, h]                              # (M, M)  (U^-1)^T, f32

        # kernel_1^T = softmax_over_M( scale * nc @ q^T )           (M, N) lane-dense
        ct = dot32(nc, q, c_D) * scale
        ct = ct - jnp.max(ct, axis=0, keepdims=True)
        e1 = jnp.exp(ct)
        k1t = e1 * pl.reciprocal(jnp.sum(e1, axis=0, keepdims=True), approx=True)

        # kernel_3 = softmax_over_N( scale * nr @ K^T + mask_bias ) (M, N) lane-dense
        r = dot32(nr, k, c_D) * scale + bias
        r = r - jnp.max(r, axis=-1, keepdims=True)
        e3 = jnp.exp(r)
        k3 = e3 * pl.reciprocal(jnp.sum(e3, axis=-1, keepdims=True), approx=True)

        # RV = kernel_3 @ V                                         (M, D)
        rv = dot32(k3.astype(v.dtype), v, (((1,), (0,)), ((), ())))

        # X^T = RV^T @ (U^-1)^T @ kernel_1^T                        (D, N) lane-dense
        t = dot32(vmt, k1t, (((1,), (0,)), ((), ())))               # (M, N)
        xt = dot32(rv, t, (((0,), (0,)), ((), ())))                 # (D, N) = rv^T @ t

        o_ref[0, h] = xt.astype(o_ref.dtype)


def cur_attention(Q, K, V, mask, *, head_dim, select_number, n_iter=6,
                  compute_dtype=jnp.bfloat16):
    """CURAttention forward.  Q,K,V: (B,H,N,D) f32; mask: (B,N) bool (True=valid).

    compute_dtype controls the MXU operand precision (default bf16, f32 accum);
    all softmax / U / Newton-Schulz math stays f32.
    """
    B, H, N, D = Q.shape
    Mn = select_number
    f32 = jnp.float32
    scale = 1.0 / math.sqrt(head_dim)

    Qc = Q.astype(compute_dtype)
    Kc = K.astype(compute_dtype)
    Vc = V.astype(compute_dtype)

    # --- selection glue (plain JAX): top-k rows of K by masked row sum ---
    # TODO(synk): no clean TPU-Pallas top-k/sort; done with lax.top_k in XLA.
    somme = jnp.sum(K.astype(f32), axis=-1)                         # (B, H, N)
    somme = jnp.where(mask[:, None, :], somme, -jnp.finfo(f32).max)
    _, index = lax.top_k(somme, Mn)                                 # (B, H, M)
    idx = index[..., None]
    ncc = jnp.take_along_axis(Kc, idx, axis=2)                      # (B, H, M, D)
    nrc = jnp.take_along_axis(Qc, idx, axis=2)                      # (B, H, M, D)

    # --- U = softmax(scale * nr @ nc^T) and its Newton-Schulz inverse, batched
    #     in plain JAX/f32 (hoisted off the in-kernel MXU critical path) ---
    u = jax.nn.softmax(
        scale * jnp.einsum('bhmd,bhkd->bhmk', nrc, ncc,
                           preferred_element_type=f32), axis=-1)    # (B,H,M,M) f32
    eye = jnp.eye(Mn, dtype=f32)
    vm = (1.0 / jnp.max(jnp.sum(u, axis=-2), axis=-1))[..., None, None] \
        * jnp.swapaxes(u, -1, -2)                                   # per-(b,h) init
    for _ in range(n_iter):
        kv = u @ vm
        vm = 0.25 * vm @ (13.0 * eye - kv @ (15.0 * eye - kv @ (7.0 * eye - kv)))
    vm_t = jnp.swapaxes(vm, -1, -2)                                 # pass (U^-1)^T

    # --- additive key mask: 0 (valid) / -1e30 (masked); finite, no -inf risk ---
    mask_bias = jnp.where(mask, 0.0, -1e30).astype(f32)[:, None, :]  # (B, 1, N)

    kernel = functools.partial(_cur_attention_kernel, scale=scale)
    out_t = pl.pallas_call(
        kernel,
        out_shape=jax.ShapeDtypeStruct((B, H, D, N), f32),          # lane-dense (..., D, N)
        grid_spec=pltpu.PrefetchScalarGridSpec(
            num_scalar_prefetch=0,
            grid=(B,),                                              # >=2 parallel steps (v7x: 2 TCs)
            in_specs=[
                pl.BlockSpec((1, 1, N), lambda b: (b, 0, 0)),        # mask bias
                pl.BlockSpec((1, H, N, D), lambda b: (b, 0, 0, 0)),  # Q
                pl.BlockSpec((1, H, N, D), lambda b: (b, 0, 0, 0)),  # K
                pl.BlockSpec((1, H, N, D), lambda b: (b, 0, 0, 0)),  # V
                pl.BlockSpec((1, H, Mn, D), lambda b: (b, 0, 0, 0)),  # nc
                pl.BlockSpec((1, H, Mn, D), lambda b: (b, 0, 0, 0)),  # nr (unscaled)
                pl.BlockSpec((1, H, Mn, Mn), lambda b: (b, 0, 0, 0)),  # (U^-1)^T
            ],
            out_specs=pl.BlockSpec((1, H, D, N), lambda b: (b, 0, 0, 0)),
        ),
        compiler_params=pltpu.CompilerParams(
            dimension_semantics=("parallel",)),
    )(mask_bias, Qc, Kc, Vc, ncc, nrc, vm_t)

    return jnp.swapaxes(out_t, -1, -2).astype(Q.dtype)              # (B, H, N, D)


def cur_attention_ref(Q, K, V, mask, *, head_dim, select_number, n_iter=6,
                      compute_dtype=jnp.float32):
    """Plain-JAX mirror of the PyTorch forward (select_type='sum', no copy_rv,
    per-head NS init).  With compute_dtype=f32 this is the exact f32 module
    semantics; with bf16 it mirrors the kernel's mixed-precision scheme
    (bf16 MXU operands, f32 accumulation / softmax / U / Newton-Schulz)."""
    f32 = jnp.float32
    B, H, N, D = Q.shape
    Mn = select_number
    scale = 1.0 / math.sqrt(head_dim)

    somme = jnp.sum(K.astype(f32), axis=-1)
    somme = jnp.where(mask[:, None, :], somme, -jnp.finfo(f32).max)
    index = jnp.argsort(-somme, axis=-1)[:, :, :Mn]
    idx = index[..., None]

    Qc = Q.astype(compute_dtype)
    Kc = K.astype(compute_dtype)
    Vc = V.astype(compute_dtype)
    nc = jnp.take_along_axis(Kc, idx, axis=2)
    nr = jnp.take_along_axis(Qc, idx, axis=2)

    c = scale * jnp.einsum('bhnd,bhmd->bhnm', Qc, nc, preferred_element_type=f32)
    r = scale * jnp.einsum('bhmd,bhnd->bhmn', nr, Kc, preferred_element_type=f32)
    r = jnp.where(mask[:, None, None, :], r, -jnp.finfo(f32).max)
    kernel_1 = jax.nn.softmax(c, axis=-1)                           # (B,H,N,M) f32
    kernel_3 = jax.nn.softmax(r, axis=-1)                           # (B,H,M,N) f32
    u = jnp.take_along_axis(kernel_1, idx, axis=2)                  # (B,H,M,M) f32

    eye = jnp.eye(Mn, dtype=f32)
    vm = (1.0 / jnp.max(jnp.sum(u, axis=-2), axis=-1))[..., None, None] \
        * jnp.swapaxes(u, -1, -2)
    for _ in range(n_iter):
        kv = u @ vm
        vm = 0.25 * vm @ (13.0 * eye - kv @ (15.0 * eye - kv @ (7.0 * eye - kv)))

    rv = jnp.einsum('bhmn,bhnd->bhmd', kernel_3.astype(compute_dtype), Vc,
                    preferred_element_type=f32)
    return jnp.einsum('bhnm,bhmd->bhnd', kernel_1,
                      jnp.einsum('bhmk,bhkd->bhmd', vm, rv))


if __name__ == "__main__":
    # small, module-consistent shapes: batch=2, heads=2, seq=128, head_dim=32,
    # select_number=8
    B, H, N, D, Mn = 2, 2, 128, 32, 8
    key = jax.random.PRNGKey(0)
    kq, kk, kv = jax.random.split(key, 3)
    Q = jax.random.normal(kq, (B, H, N, D), jnp.float32)
    K = jax.random.normal(kk, (B, H, N, D), jnp.float32)
    V = jax.random.normal(kv, (B, H, N, D), jnp.float32)
    lengths = jnp.array([100, N])
    mask = jnp.arange(N)[None, :] < lengths[:, None]                # (B, N) bool

    # 1) f32 path: validates the f32 module semantics of the Pallas kernel.
    out_f32 = jax.block_until_ready(
        cur_attention(Q, K, V, mask, head_dim=D, select_number=Mn,
                      compute_dtype=jnp.float32))
    ref_f32 = cur_attention_ref(Q, K, V, mask, head_dim=D, select_number=Mn,
                                compute_dtype=jnp.float32)
    np.testing.assert_allclose(np.asarray(out_f32), np.asarray(ref_f32),
                               rtol=2e-2, atol=2e-2)

    # 2) bf16 fast path (default): validated against a plain-JAX reference
    #    using the same mixed-precision scheme (bf16 operands, f32 accum).
    out_bf16 = jax.block_until_ready(
        cur_attention(Q, K, V, mask, head_dim=D, select_number=Mn))
    ref_bf16 = cur_attention_ref(Q, K, V, mask, head_dim=D, select_number=Mn,
                                 compute_dtype=jnp.bfloat16)
    np.testing.assert_allclose(np.asarray(out_bf16), np.asarray(ref_bf16),
                               rtol=2e-2, atol=2e-2)

    print("KERNEL_OK")
</pallas_src>

<mosaic_0001>
module attributes {stable_mosaic.version = 11 : i64} {
  func.func @_cur_attention_kernel(%arg0: i32, %arg1: memref<1x1x128xf32, #tpu.memory_space<vmem>>, %arg2: memref<1x2x128x32xf32, #tpu.memory_space<vmem>>, %arg3: memref<1x2x128x32xf32, #tpu.memory_space<vmem>>, %arg4: memref<1x2x128x32xf32, #tpu.memory_space<vmem>>, %arg5: memref<1x2x8x32xf32, #tpu.memory_space<vmem>>, %arg6: memref<1x2x8x32xf32, #tpu.memory_space<vmem>>, %arg7: memref<1x2x8x8xf32, #tpu.memory_space<vmem>>, %arg8: memref<1x2x32x128xf32, #tpu.memory_space<vmem>>) attributes {dimension_semantics = [#tpu.dimension_semantics<parallel>], iteration_bounds = array<i64: 2>, scalar_prefetch = 0 : i64, scratch_operands = 0 : i64, tpu.core_type = #tpu.core_type<tc>, window_params = [{transform_indices = @transform_0, window_bounds = array<i64: 1, 1, 128>}, {transform_indices = @transform_1, window_bounds = array<i64: 1, 2, 128, 32>}, {transform_indices = @transform_2, window_bounds = array<i64: 1, 2, 128, 32>}, {transform_indices = @transform_3, window_bounds = array<i64: 1, 2, 128, 32>}, {transform_indices = @transform_4, window_bounds = array<i64: 1, 2, 8, 32>}, {transform_indices = @transform_5, window_bounds = array<i64: 1, 2, 8, 32>}, {transform_indices = @transform_6, window_bounds = array<i64: 1, 2, 8, 8>}, {transform_indices = @transform_7, window_bounds = array<i64: 1, 2, 32, 128>}]} {
    %c0 = arith.constant 0 : index
    %c0_0 = arith.constant 0 : index
    %c0_1 = arith.constant 0 : index
    %0 = vector.load %arg1[%c0, %c0_0, %c0_1] : memref<1x1x128xf32, #tpu.memory_space<vmem>>, vector<1x1x128xf32>
    %1 = vector.shape_cast %0 : vector<1x1x128xf32> to vector<1x128xf32>
    %c0_2 = arith.constant 0 : index
    %c0_3 = arith.constant 0 : index
    %c0_4 = arith.constant 0 : index
    %c0_5 = arith.constant 0 : index
    %2 = vector.load %arg2[%c0_2, %c0_3, %c0_4, %c0_5] : memref<1x2x128x32xf32, #tpu.memory_space<vmem>>, vector<1x1x128x32xf32>
    %3 = vector.shape_cast %2 : vector<1x1x128x32xf32> to vector<128x32xf32>
    %c0_6 = arith.constant 0 : index
    %c0_7 = arith.constant 0 : index
    %c0_8 = arith.constant 0 : index
    %c0_9 = arith.constant 0 : index
    %4 = vector.load %arg3[%c0_6, %c0_7, %c0_8, %c0_9] : memref<1x2x128x32xf32, #tpu.memory_space<vmem>>, vector<1x1x128x32xf32>
    %5 = vector.shape_cast %4 : vector<1x1x128x32xf32> to vector<128x32xf32>
    %c0_10 = arith.constant 0 : index
    %c0_11 = arith.constant 0 : index
    %c0_12 = arith.constant 0 : index
    %c0_13 = arith.constant 0 : index
    %6 = vector.load %arg4[%c0_10, %c0_11, %c0_12, %c0_13] : memref<1x2x128x32xf32, #tpu.memory_space<vmem>>, vector<1x1x128x32xf32>
    %7 = vector.shape_cast %6 : vector<1x1x128x32xf32> to vector<128x32xf32>
    %c0_14 = arith.constant 0 : index
    %c0_15 = arith.constant 0 : index
    %c0_16 = arith.constant 0 : index
    %c0_17 = arith.constant 0 : index
    %8 = vector.load %arg5[%c0_14, %c0_15, %c0_16, %c0_17] : memref<1x2x8x32xf32, #tpu.memory_space<vmem>>, vector<1x1x8x32xf32>
    %9 = vector.shape_cast %8 : vector<1x1x8x32xf32> to vector<8x32xf32>
    %c0_18 = arith.constant 0 : index
    %c0_19 = arith.constant 0 : index
    %c0_20 = arith.constant 0 : index
    %c0_21 = arith.constant 0 : index
    %10 = vector.load %arg6[%c0_18, %c0_19, %c0_20, %c0_21] : memref<1x2x8x32xf32, #tpu.memory_space<vmem>>, vector<1x1x8x32xf32>
    %11 = vector.shape_cast %10 : vector<1x1x8x32xf32> to vector<8x32xf32>
    %c0_22 = arith.constant 0 : index
    %c0_23 = arith.constant 0 : index
    %c0_24 = arith.constant 0 : index
    %c0_25 = arith.constant 0 : index
    %12 = vector.load %arg7[%c0_22, %c0_23, %c0_24, %c0_25] : memref<1x2x8x8xf32, #tpu.memory_space<vmem>>, vector<1x1x8x8xf32>
    %13 = vector.shape_cast %12 : vector<1x1x8x8xf32> to vector<8x8xf32>
    %cst = arith.constant dense<0.000000e+00> : vector<8x128xf32>
    %14 = tpu.matmul %9, %3, %cst {dimension_numbers = #tpu.dot_dimension_numbers<[1], [1], [0], [0], [0, 0, 1, 0], [], []>} : vector<8x32xf32>, vector<128x32xf32>, vector<8x128xf32> -> vector<8x128xf32>
    %cst_26 = arith.constant 0.176776692 : f32
    %15 = vector.broadcast %cst_26 : f32 to vector<8x128xf32>
    %16 = arith.mulf %14, %15 : vector<8x128xf32>
    %cst_27 = arith.constant dense<0xFF800000> : vector<128xf32>
    %17 = vector.multi_reduction <maximumf>, %16, %cst_27 [0] : vector<8x128xf32> to vector<128xf32>
    %18 = vector.shape_cast %17 : vector<128xf32> to vector<1x128xf32>
    %19 = vector.broadcast %18 : vector<1x128xf32> to vector<8x128xf32>
    %20 = arith.subf %16, %19 : vector<8x128xf32>
    %21 = math.exp %20 : vector<8x128xf32>
    %cst_28 = arith.constant dense<0.000000e+00> : vector<128xf32>
    %22 = vector.multi_reduction <add>, %21, %cst_28 [0] : vector<8x128xf32> to vector<128xf32>
    %23 = vector.shape_cast %22 : vector<128xf32> to vector<1x128xf32>
    %24 = tpu.reciprocal %23 {approx = true} : vector<1x128xf32> -> vector<1x128xf32>
    %25 = vector.broadcast %24 : vector<1x128xf32> to vector<8x128xf32>
    %26 = arith.mulf %21, %25 : vector<8x128xf32>
    %cst_29 = arith.constant dense<0.000000e+00> : vector<8x128xf32>
    %27 = tpu.matmul %11, %5, %cst_29 {dimension_numbers = #tpu.dot_dimension_numbers<[1], [1], [0], [0], [0, 0, 1, 0], [], []>} : vector<8x32xf32>, vector<128x32xf32>, vector<8x128xf32> -> vector<8x128xf32>
    %cst_30 = arith.constant 0.176776692 : f32
    %28 = vector.broadcast %cst_30 : f32 to vector<8x128xf32>
    %29 = arith.mulf %27, %28 : vector<8x128xf32>
    %30 = vector.broadcast %1 : vector<1x128xf32> to vector<8x128xf32>
    %31 = arith.addf %29, %30 : vector<8x128xf32>
    %cst_31 = arith.constant dense<0xFF800000> : vector<8xf32>
    %32 = vector.multi_reduction <maximumf>, %31, %cst_31 [1] : vector<8x128xf32> to vector<8xf32>
    %33 = vector.shape_cast %32 : vector<8xf32> to vector<8x1xf32>
    %34 = vector.broadcast %33 : vector<8x1xf32> to vector<8x128xf32>
    %35 = arith.subf %31, %34 : vector<8x128xf32>
    %36 = math.exp %35 : vector<8x128xf32>
    %cst_32 = arith.constant dense<0.000000e+00> : vector<8xf32>
    %37 = vector.multi_reduction <add>, %36, %cst_32 [1] : vector<8x128xf32> to vector<8xf32>
    %38 = vector.shape_cast %37 : vector<8xf32> to vector<8x1xf32>
    %39 = tpu.reciprocal %38 {approx = true} : vector<8x1xf32> -> vector<8x1xf32>
    %40 = vector.broadcast %39 : vector<8x1xf32> to vector<8x128xf32>
    %41 = arith.mulf %36, %40 : vector<8x128xf32>
    %cst_33 = arith.constant dense<0.000000e+00> : vector<8x32xf32>
    %42 = tpu.matmul %41, %7, %cst_33 {dimension_numbers = #tpu.dot_dimension_numbers<[1], [0], [0], [1], [0, 0, 1, 1], [], []>} : vector<8x128xf32>, vector<128x32xf32>, vector<8x32xf32> -> vector<8x32xf32>
    %cst_34 = arith.constant dense<0.000000e+00> : vector<8x128xf32>
    %43 = tpu.matmul %13, %26, %cst_34 {dimension_numbers = #tpu.dot_dimension_numbers<[1], [0], [0], [1], [0, 0, 1, 1], [], []>} : vector<8x8xf32>, vector<8x128xf32>, vector<8x128xf32> -> vector<8x128xf32>
    %cst_35 = arith.constant dense<0.000000e+00> : vector<32x128xf32>
    %44 = tpu.matmul %42, %43, %cst_35 {dimension_numbers = #tpu.dot_dimension_numbers<[0], [0], [1], [1], [0, 1, 1, 1], [], []>} : vector<8x32xf32>, vector<8x128xf32>, vector<32x128xf32> -> vector<32x128xf32>
    %c0_36 = arith.constant 0 : index
    %c0_37 = arith.constant 0 : index
    %c0_38 = arith.constant 0 : index
    %c0_39 = arith.constant 0 : index
    %45 = vector.load %arg8[%c0_36, %c0_37, %c0_38, %c0_39] : memref<1x2x32x128xf32, #tpu.memory_space<vmem>>, vector<1x1x32x128xf32>
    %46 = vector.shape_cast %45 : vector<1x1x32x128xf32> to vector<32x128xf32>
    %47 = vector.shape_cast %44 : vector<32x128xf32> to vector<1x1x32x128xf32>
    tpu.vector_store %arg8[%c0_36, %c0_37, %c0_38, %c0_39], %47 {strides = array<i32>} : memref<1x2x32x128xf32, #tpu.memory_space<vmem>>, vector<1x1x32x128xf32>,
    %c0_40 = arith.constant 0 : index
    %c1 = arith.constant 1 : index
    %c0_41 = arith.constant 0 : index
    %c0_42 = arith.constant 0 : index
    %48 = vector.load %arg2[%c0_40, %c1, %c0_41, %c0_42] : memref<1x2x128x32xf32, #tpu.memory_space<vmem>>, vector<1x1x128x32xf32>
    %49 = vector.shape_cast %48 : vector<1x1x128x32xf32> to vector<128x32xf32>
    %c0_43 = arith.constant 0 : index
    %c1_44 = arith.constant 1 : index
    %c0_45 = arith.constant 0 : index
    %c0_46 = arith.constant 0 : index
    %50 = vector.load %arg3[%c0_43, %c1_44, %c0_45, %c0_46] : memref<1x2x128x32xf32, #tpu.memory_space<vmem>>, vector<1x1x128x32xf32>
    %51 = vector.shape_cast %50 : vector<1x1x128x32xf32> to vector<128x32xf32>
    %c0_47 = arith.constant 0 : index
    %c1_48 = arith.constant 1 : index
    %c0_49 = arith.constant 0 : index
    %c0_50 = arith.constant 0 : index
    %52 = vector.load %arg4[%c0_47, %c1_48, %c0_49, %c0_50] : memref<1x2x128x32xf32, #tpu.memory_space<vmem>>, vector<1x1x128x32xf32>
    %53 = vector.shape_cast %52 : vector<1x1x128x32xf32> to vector<128x32xf32>
    %c0_51 = arith.constant 0 : index
    %c1_52 = arith.constant 1 : index
    %c0_53 = arith.constant 0 : index
    %c0_54 = arith.constant 0 : index
    %54 = vector.load %arg5[%c0_51, %c1_52, %c0_53, %c0_54] : memref<1x2x8x32xf32, #tpu.memory_space<vmem>>, vector<1x1x8x32xf32>
    %55 = vector.shape_cast %54 : vector<1x1x8x32xf32> to vector<8x32xf32>
    %c0_55 = arith.constant 0 : index
    %c1_56 = arith.constant 1 : index
    %c0_57 = arith.constant 0 : index
    %c0_58 = arith.constant 0 : index
    %56 = vector.load %arg6[%c0_55, %c1_56, %c0_57, %c0_58] : memref<1x2x8x32xf32, #tpu.memory_space<vmem>>, vector<1x1x8x32xf32>
    %57 = vector.shape_cast %56 : vector<1x1x8x32xf32> to vector<8x32xf32>
    %c0_59 = arith.constant 0 : index
    %c1_60 = arith.constant 1 : index
    %c0_61 = arith.constant 0 : index
    %c0_62 = arith.constant 0 : index
    %58 = vector.load %arg7[%c0_59, %c1_60, %c0_61, %c0_62] : memref<1x2x8x8xf32, #tpu.memory_space<vmem>>, vector<1x1x8x8xf32>
    %59 = vector.shape_cast %58 : vector<1x1x8x8xf32> to vector<8x8xf32>
    %cst_63 = arith.constant dense<0.000000e+00> : vector<8x128xf32>
    %60 = tpu.matmul %55, %49, %cst_63 {dimension_numbers = #tpu.dot_dimension_numbers<[1], [1], [0], [0], [0, 0, 1, 0], [], []>} : vector<8x32xf32>, vector<128x32xf32>, vector<8x128xf32> -> vector<8x128xf32>
    %cst_64 = arith.constant 0.176776692 : f32
    %61 = vector.broadcast %cst_64 : f32 to vector<8x128xf32>
    %62 = arith.mulf %60, %61 : vector<8x128xf32>
    %cst_65 = arith.constant dense<0xFF800000> : vector<128xf32>
    %63 = vector.multi_reduction <maximumf>, %62, %cst_65 [0] : vector<8x128xf32> to vector<128xf32>
    %64 = vector.shape_cast %63 : vector<128xf32> to vector<1x128xf32>
    %65 = vector.broadcast %64 : vector<1x128xf32> to vector<8x128xf32>
    %66 = arith.subf %62, %65 : vector<8x128xf32>
    %67 = math.exp %66 : vector<8x128xf32>
    %cst_66 = arith.constant dense<0.000000e+00> : vector<128xf32>
    %68 = vector.multi_reduction <add>, %67, %cst_66 [0] : vector<8x128xf32> to vector<128xf32>
    %69 = vector.shape_cast %68 : vector<128xf32> to vector<1x128xf32>
    %70 = tpu.reciprocal %69 {approx = true} : vector<1x128xf32> -> vector<1x128xf32>
    %71 = vector.broadcast %70 : vector<1x128xf32> to vector<8x128xf32>
    %72 = arith.mulf %67, %71 : vector<8x128xf32>
    %cst_67 = arith.constant dense<0.000000e+00> : vector<8x128xf32>
    %73 = tpu.matmul %57, %51, %cst_67 {dimension_numbers = #tpu.dot_dimension_numbers<[1], [1], [0], [0], [0, 0, 1, 0], [], []>} : vector<8x32xf32>, vector<128x32xf32>, vector<8x128xf32> -> vector<8x128xf32>
    %cst_68 = arith.constant 0.176776692 : f32
    %74 = vector.broadcast %cst_68 : f32 to vector<8x128xf32>
    %75 = arith.mulf %73, %74 : vector<8x128xf32>
    %76 = vector.broadcast %1 : vector<1x128xf32> to vector<8x128xf32>
    %77 = arith.addf %75, %76 : vector<8x128xf32>
    %cst_69 = arith.constant dense<0xFF800000> : vector<8xf32>
    %78 = vector.multi_reduction <maximumf>, %77, %cst_69 [1] : vector<8x128xf32> to vector<8xf32>
    %79 = vector.shape_cast %78 : vector<8xf32> to vector<8x1xf32>
    %80 = vector.broadcast %79 : vector<8x1xf32> to vector<8x128xf32>
    %81 = arith.subf %77, %80 : vector<8x128xf32>
    %82 = math.exp %81 : vector<8x128xf32>
    %cst_70 = arith.constant dense<0.000000e+00> : vector<8xf32>
    %83 = vector.multi_reduction <add>, %82, %cst_70 [1] : vector<8x128xf32> to vector<8xf32>
    %84 = vector.shape_cast %83 : vector<8xf32> to vector<8x1xf32>
    %85 = tpu.reciprocal %84 {approx = true} : vector<8x1xf32> -> vector<8x1xf32>
    %86 = vector.broadcast %85 : vector<8x1xf32> to vector<8x128xf32>
    %87 = arith.mulf %82, %86 : vector<8x128xf32>
    %cst_71 = arith.constant dense<0.000000e+00> : vector<8x32xf32>
    %88 = tpu.matmul %87, %53, %cst_71 {dimension_numbers = #tpu.dot_dimension_numbers<[1], [0], [0], [1], [0, 0, 1, 1], [], []>} : vector<8x128xf32>, vector<128x32xf32>, vector<8x32xf32> -> vector<8x32xf32>
    %cst_72 = arith.constant dense<0.000000e+00> : vector<8x128xf32>
    %89 = tpu.matmul %59, %72, %cst_72 {dimension_numbers = #tpu.dot_dimension_numbers<[1], [0], [0], [1], [0, 0, 1, 1], [], []>} : vector<8x8xf32>, vector<8x128xf32>, vector<8x128xf32> -> vector<8x128xf32>
    %cst_73 = arith.constant dense<0.000000e+00> : vector<32x128xf32>
    %90 = tpu.matmul %88, %89, %cst_73 {dimension_numbers = #tpu.dot_dimension_numbers<[0], [0], [1], [1], [0, 1, 1, 1], [], []>} : vector<8x32xf32>, vector<8x128xf32>, vector<32x128xf32> -> vector<32x128xf32>
    %c0_74 = arith.constant 0 : index
    %c1_75 = arith.constant 1 : index
    %c0_76 = arith.constant 0 : index
    %c0_77 = arith.constant 0 : index
    %91 = vector.load %arg8[%c0_74, %c1_75, %c0_76, %c0_77] : memref<1x2x32x128xf32, #tpu.memory_space<vmem>>, vector<1x1x32x128xf32>
    %92 = vector.shape_cast %91 : vector<1x1x32x128xf32> to vector<32x128xf32>
    %93 = vector.shape_cast %90 : vector<32x128xf32> to vector<1x1x32x128xf32>
    tpu.vector_store %arg8[%c0_74, %c1_75, %c0_76, %c0_77], %93 {strides = array<i32>} : memref<1x2x32x128xf32, #tpu.memory_space<vmem>>, vector<1x1x32x128xf32>,
    return
  }
  func.func @transform_0(%arg0: i32) -> (i32, i32, i32) {
    %c0_i32 = arith.constant 0 : i32
    %c0_i32_0 = arith.constant 0 : i32
    %c0_i32_1 = arith.constant 0 : i32
    return %arg0, %c0_i32, %c0_i32_0 : i32, i32, i32
  }
  func.func @transform_1(%arg0: i32) -> (i32, i32, i32, i32) {
    %c0_i32 = arith.constant 0 : i32
    %c0_i32_0 = arith.constant 0 : i32
    %c0_i32_1 = arith.constant 0 : i32
    %c0_i32_2 = arith.constant 0 : i32
    return %arg0, %c0_i32, %c0_i32_0, %c0_i32_1 : i32, i32, i32, i32
  }
  func.func @transform_2(%arg0: i32) -> (i32, i32, i32, i32) {
    %c0_i32 = arith.constant 0 : i32
    %c0_i32_0 = arith.constant 0 : i32
    %c0_i32_1 = arith.constant 0 : i32
    %c0_i32_2 = arith.constant 0 : i32
    return %arg0, %c0_i32, %c0_i32_0, %c0_i32_1 : i32, i32, i32, i32
  }
  func.func @transform_3(%arg0: i32) -> (i32, i32, i32, i32) {
    %c0_i32 = arith.constant 0 : i32
    %c0_i32_0 = arith.constant 0 : i32
    %c0_i32_1 = arith.constant 0 : i32
    %c0_i32_2 = arith.constant 0 : i32
    return %arg0, %c0_i32, %c0_i32_0, %c0_i32_1 : i32, i32, i32, i32
  }
  func.func @transform_4(%arg0: i32) -> (i32, i32, i32, i32) {
    %c0_i32 = arith.constant 0 : i32
    %c0_i32_0 = arith.constant 0 : i32
    %c0_i32_1 = arith.constant 0 : i32
    %c0_i32_2 = arith.constant 0 : i32
    return %arg0, %c0_i32, %c0_i32_0, %c0_i32_1 : i32, i32, i32, i32
  }
  func.func @transform_5(%arg0: i32) -> (i32, i32, i32, i32) {
    %c0_i32 = arith.constant 0 : i32
    %c0_i32_0 = arith.constant 0 : i32
    %c0_i32_1 = arith.constant 0 : i32
    %c0_i32_2 = arith.constant 0 : i32
    return %arg0, %c0_i32, %c0_i32_0, %c0_i32_1 : i32, i32, i32, i32
  }
  func.func @transform_6(%arg0: i32) -> (i32, i32, i32, i32) {
    %c0_i32 = arith.constant 0 : i32
    %c0_i32_0 = arith.constant 0 : i32
    %c0_i32_1 = arith.constant 0 : i32
    %c0_i32_2 = arith.constant 0 : i32
    return %arg0, %c0_i32, %c0_i32_0, %c0_i32_1 : i32, i32, i32, i32
  }
  func.func @transform_7(%arg0: i32) -> (i32, i32, i32, i32) {
    %c0_i32 = arith.constant 0 : i32
    %c0_i32_0 = arith.constant 0 : i32
    %c0_i32_1 = arith.constant 0 : i32
    %c0_i32_2 = arith.constant 0 : i32
    return %arg0, %c0_i32, %c0_i32_0, %c0_i32_1 : i32, i32, i32, i32
  }
}

</mosaic_0001>

<bundles_post_ra>
// kernel: tpu_custom_call.1
= control target key start
LH: loop header
LB: loop body
LE: loop exit
PB: predicated region body
PF: predicated region fallthrough
CT: control target
= control target key end

     0   :  { %12 = vsyncpa [#allocation3], 0  ;;  %s2897_s0 = inlined_call_operand.vmem [shape: f32[2,1,128], index: 0, kind: input, shape index: {}]   ;;  %s2898_s1 = inlined_call_operand.vmem [shape: f32[2,2,128,32], index: 1, kind: input, shape index: {}]   ;;  %s2899_s2 = inlined_call_operand.vmem [shape: f32[2,2,128,32], index: 2, kind: input, shape index: {}]   ;;  %s2900_s3 = inlined_call_operand.vmem [shape: f32[2,2,128,32], index: 3, kind: input, shape index: {}]   ;;  %s2901_s4 = inlined_call_operand.vmem [shape: f32[2,2,8,32], index: 4, kind: input, shape index: {}]   ;;  %s2902_s5 = inlined_call_operand.vmem [shape: f32[2,2,8,32], index: 5, kind: input, shape index: {}]   ;;  %s2903_s6 = inlined_call_operand.vmem [shape: f32[2,2,8,8], index: 6, kind: input, shape index: {}]   ;;  %s2904_s7 = inlined_call_operand.hbm [shape: f32[2,2,32,128], index: 7, kind: output, shape index: {}]  }
   0x1   :  { %14 = vsyncpa [#allocation3 + $0x1], 0  ;;  %s2429_s24 = smov 0   ;;  %s2431_s25 = smov 0  }
   0x2   :  { %s2433_s26 = smov 0   ;;  %s2435_s27 = smov 0  }
   0x3 LB: > { %s2450_s28 = sadd.s32 4294967295, %s2382_s27   ;;  %s1748_s29 = sadd.s32 4294967294, %s2382_s27   ;;  %s2382_s27 = sphi %s2435_s27, %s2910_s27   ;;  %s2378_s26 = sphi %s2433_s26, %s2909_s26   ;;  %s2374_s25 = sphi %s2431_s25, %s2908_s25   ;;  %s2370_s24 = sphi %s2429_s24, %s2907_s24  }
   0x4   : > { %s2454_s30 = sadd.s32 1, %s2382_s27   ;;  %s209_s8 = sadd.s32 1, %s2378_s26 }
   0x5   : > { %s206_s9 = ssub.s32 %s2382_s27, %s2454_s30  ;;  %p219_p0 = scmp.ne.s32.totalorder %s2378_s26, %s2374_s25 }
   0x6   : > { %p207_p1 = scmp.eq.s32.totalorder %s206_s9, 0  ;;  %p220_p2 = scmp.eq.s32.totalorder %s2450_s28, 1 }
   0x7   : > { %p225_p3 = scmp.ne.s32.totalorder %s2374_s25, %s2370_s24  ;;  %p226_p4 = scmp.eq.s32.totalorder %s1748_s29, 1 }
   0x8   : > { %s2465_s10 = scalar_select %p207_p1, %s2378_s26, %s209_s8  }
   0x9   : > { %p2467_p5 = por %p220_p2, %p219_p0  ;;  %p2471_p6 = por %p226_p4, %p225_p3 }
   0xa   : > { %p1751_p7 = scmp.ge.s32.totalorder %s2382_s27, 1  ;;  %p298_p8 = scmp.lt.s32.totalorder %s2382_s27, 3 }
   0xc   : > { %p299_p9 = pnand %p1751_p7, %p298_p8 }
   0xd   : > { %p358_p10 = scmp.lt.s32.totalorder (!%p299_p9), %s2450_s28, 1 }
   0xe   : > { %302 = sbr.rel (%p299_p9) target bundleno = 1704 (0x6a8), region = 48 }
  0x13   : > { %v2384_v0 = vmov 0.0   ;;  %vm2385_vm0 = vmmov 0   ;;  %s2482_s13 = scalar_select %p358_p10, %s2450_s28, 1  ;;  %vm443_vm1 = vcmask 261120   ;;  %vm791_vm2 = vcmask 64512  }
  0x14   : > { %2062 = vmatprep.subr.mxu1 %v2384_v0  ;;  %2094 = vmatprep.mubr.msk.f32.mxu1 %vm2385_vm0, %v2384_v0 }
  0x15   : > { %2027 = vmatprep.subr.mxu0 %v2384_v0  ;;  %2059 = vmatprep.mubr.msk.f32.mxu0 %vm2385_vm0, %v2384_v0  ;;  %s2488_s14 = sshll.u32 %s2482_s13, 8  ;;  %s2540_s18 = sshll.u32 %s2482_s13, 4 }
  0x16   : > { %s2494_s17 = scalar_lea.vmem %s2899_s2, %s2488_s14  ;;  %s2549_s21 = scalar_lea.vmem %s2902_s5, %s2540_s18 }
  0x17   : > { %v423_v1 = vld [vmem:[%s2494_s17 + $0x78] sm:$0xff]  ;;  %v422_v2 = vld [vmem:[%s2494_s17 + $0x70] sm:$0xff]  ;;  %v421_v3 = vld [vmem:[%s2494_s17 + $0x68] sm:$0xff]  ;;  %s360_s29 = scalar_lea.vmem %s2897_s0, %s2482_s13  ;;  %s2571_s15 = scalar_lea.vmem %s2898_s1, %s2488_s14 }
  0x18   : > { %2063 = vmatpush3.xpose.msk.msra.mxu1 %vm443_vm1, %v423_v1  ;;  %v420_v4 = vld [vmem:[%s2494_s17 + $0x60] sm:$0xff]  ;;  %v419_v5 = vld [vmem:[%s2494_s17 + $0x58] sm:$0xff]  ;;  %v418_v6 = vld [vmem:[%s2494_s17 + $0x50] sm:$0xff]  ;;  %s2623_s19 = scalar_lea.vmem %s2901_s4, %s2540_s18  ;;  %s2629_s23 = scalar_lea.vmem %s2900_s3, %s2488_s14 }
  0x19   : > { %2064 = vmatprep.subr.mxu1 %v2384_v0  ;;  %v417_v7 = vld [vmem:[%s2494_s17 + $0x48] sm:$0xff]  ;;  %v416_v8 = vld [vmem:[%s2494_s17 + $0x40] sm:$0xff]  ;;  %v415_v9 = vld [vmem:[%s2494_s17 + $0x38] sm:$0xff]  ;;  %s2689_s8 = scalar_lea.vmem %s2903_s6, %s2540_s18 }
  0x1a   : > { %v414_v10 = vld [vmem:[%s2494_s17 + $0x30] sm:$0xff]  ;;  %v413_v11 = vld [vmem:[%s2494_s17 + $0x28] sm:$0xff]  ;;  %v412_v12 = vld [vmem:[%s2494_s17 + $0x20] sm:$0xff] }
  0x1b   : > { %v411_v13 = vld [vmem:[%s2494_s17 + $0x18] sm:$0xff]  ;;  %v410_v14 = vld [vmem:[%s2494_s17 + $0x10] sm:$0xff]  ;;  %v409_v15 = vld [vmem:[%s2494_s17 + $0x8] sm:$0xff] }
  0x1c   : > { %2065 = vmatpush3.xpose.msk.msra.mxu1 %vm443_vm1, %v422_v2  ;;  %v408_v16 = vld [vmem:[%s2494_s17] sm:$0xff]  ;;  %v407_v23 = vld [vmem:[%s2571_s15 + $0x78] sm:$0xff]  ;;  %v406_v24 = vld [vmem:[%s2571_s15 + $0x70] sm:$0xff] }
  0x1d   : > { %2066 = vmatprep.subr.mxu1 %v2384_v0  ;;  %v441_v17 = vld [vmem:[%s2549_s21] sm:$0xff]  ;;  %2028 = vmatpush3.xpose.msk.msra.mxu0 %vm443_vm1, %v407_v23  ;;  %v405_v25 = vld [vmem:[%s2571_s15 + $0x68] sm:$0xff]  ;;  %v403_v27 = vld [vmem:[%s2571_s15 + $0x58] sm:$0xff] }
  0x1e   : > { %v2561_v19 = vld [vmem:[%s360_s29] ss:$0 sm:$0xff]  ;;  %2029 = vmatprep.subr.mxu0 %v2384_v0  ;;  %v402_v28 = vld [vmem:[%s2571_s15 + $0x50] sm:$0xff]  ;;  %v401_v29 = vld [vmem:[%s2571_s15 + $0x48] sm:$0xff] }
  0x1f   : > { %v404_v26 = vld [vmem:[%s2571_s15 + $0x60] sm:$0xff]  ;;  %v399_v31 = vld [vmem:[%s2571_s15 + $0x38] sm:$0xff]  ;;  %v398_v32 = vld [vmem:[%s2571_s15 + $0x30] sm:$0xff] }
  0x20   : > { %2067 = vmatpush3.xpose.msk.msra.mxu1 %vm443_vm1, %v421_v3  ;;  %v400_v30 = vld [vmem:[%s2571_s15 + $0x40] sm:$0xff]  ;;  %v397_v33 = vld [vmem:[%s2571_s15 + $0x28] sm:$0xff]  ;;  %v395_v35 = vld [vmem:[%s2571_s15 + $0x18] sm:$0xff] }
  0x21   : > { %2068 = vmatprep.subr.mxu1 %v2384_v0  ;;  %2030 = vmatpush3.xpose.msk.msra.mxu0 %vm443_vm1, %v406_v24  ;;  %v396_v34 = vld [vmem:[%s2571_s15 + $0x20] sm:$0xff]  ;;  %v394_v36 = vld [vmem:[%s2571_s15 + $0x10] sm:$0xff]  ;;  %v393_v37 = vld [vmem:[%s2571_s15 + $0x8] sm:$0xff] }
  0x22   : > { %2031 = vmatprep.subr.mxu0 %v2384_v0  ;;  %v392_v38 = vld [vmem:[%s2571_s15] sm:$0xff]  ;;  %v439_v40 = vld [vmem:[%s2629_s23 + $0x78] sm:$0xff]  ;;  %v438_v41 = vld [vmem:[%s2629_s23 + $0x70] sm:$0xff] }
  0x23   : > { %v440_v39 = vld [vmem:[%s2623_s19] sm:$0xff]  ;;  %v437_v42 = vld [vmem:[%s2629_s23 + $0x68] sm:$0xff]  ;;  %v435_v44 = vld [vmem:[%s2629_s23 + $0x58] sm:$0xff] }
  0x24   : > { %2069 = vmatpush3.xpose.msk.msra.mxu1 %vm443_vm1, %v420_v4  ;;  %v436_v43 = vld [vmem:[%s2629_s23 + $0x60] sm:$0xff]  ;;  %v434_v45 = vld [vmem:[%s2629_s23 + $0x50] sm:$0xff]  ;;  %v433_v46 = vld [vmem:[%s2629_s23 + $0x48] sm:$0xff] }
  0x25   : > { %2070 = vmatprep.subr.mxu1 %v2384_v0  ;;  %2032 = vmatpush3.xpose.msk.msra.mxu0 %vm443_vm1, %v405_v25  ;;  %v432_v47 = vld [vmem:[%s2629_s23 + $0x40] sm:$0xff]  ;;  %v431_v52 = vld [vmem:[%s2629_s23 + $0x38] sm:$0xff]  ;;  %v430_v53 = vld [vmem:[%s2629_s23 + $0x30] sm:$0xff] }
  0x26   : > { %2033 = vmatprep.subr.mxu0 %v2384_v0  ;;  %v429_v54 = vld [vmem:[%s2629_s23 + $0x28] sm:$0xff]  ;;  %v428_v55 = vld [vmem:[%s2629_s23 + $0x20] sm:$0xff]  ;;  %v427_v56 = vld [vmem:[%s2629_s23 + $0x18] sm:$0xff] }
  0x27   : > { %v426_v57 = vld [vmem:[%s2629_s23 + $0x10] sm:$0xff]  ;;  %v425_v58 = vld [vmem:[%s2629_s23 + $0x8] sm:$0xff]  ;;  %v424_v59 = vld [vmem:[%s2629_s23] sm:$0xff] }
  0x28   : > { %2071 = vmatpush3.xpose.msk.msra.mxu1 %vm443_vm1, %v419_v5  ;;  %v1832_v23 = vld [vmem:[%s2494_s17 + $0xd8] sm:$0xff]  ;;  %v1831_v25 = vld [vmem:[%s2494_s17 + $0xd0] sm:$0xff] }
  0x29   : > { %2072 = vmatprep.subr.mxu1 %v2384_v0  ;;  %2034 = vmatpush3.xpose.msk.msra.mxu0 %vm443_vm1, %v404_v26 }
  0x2a   : > { %2035 = vmatprep.subr.mxu0 %v2384_v0 }
  0x2c   : > { %2073 = vmatpush3.xpose.msk.msra.mxu1 %vm443_vm1, %v418_v6 }
  0x2d   : > { %2074 = vmatprep.subr.mxu1 %v2384_v0  ;;  %2036 = vmatpush3.xpose.msk.msra.mxu0 %vm443_vm1, %v403_v27  ;;  %v442_v27 = vld [vmem:[%s2689_s8] sm:$0xff] }
  0x2e   : > { %2037 = vmatprep.subr.mxu0 %v2384_v0 }
  0x30   : > { %2075 = vmatpush3.xpose.msk.msra.mxu1 %vm443_vm1, %v417_v7 }
  0x31   : > { %2076 = vmatprep.subr.mxu1 %v2384_v0  ;;  %2038 = vmatpush3.xpose.msk.msra.mxu0 %vm443_vm1, %v402_v28  ;;  %v1830_v28 = vld [vmem:[%s2494_s17 + $0xc8] sm:$0xff] }
  0x32   : > { %2039 = vmatprep.subr.mxu0 %v2384_v0 }
  0x34   : > { %2077 = vmatpush3.xpose.msk.msra.mxu1 %vm443_vm1, %v416_v8 }
  0x35   : > { %2078 = vmatprep.subr.mxu1 %v2384_v0  ;;  %2040 = vmatpush3.xpose.msk.msra.mxu0 %vm443_vm1, %v401_v29  ;;  %v1829_v29 = vld [vmem:[%s2494_s17 + $0xc0] sm:$0xff] }
  0x36   : > { %2041 = vmatprep.subr.mxu0 %v2384_v0 }
  0x38   : > { %2079 = vmatpush3.xpose.msk.msra.mxu1 %vm443_vm1, %v415_v9 }
  0x39   : > { %2080 = vmatprep.subr.mxu1 %v2384_v0  ;;  %2042 = vmatpush3.xpose.msk.msra.mxu0 %vm443_vm1, %v400_v30  ;;  %v1828_v30 = vld [vmem:[%s2494_s17 + $0xb8] sm:$0xff] }
  0x3a   : > { %2043 = vmatprep.subr.mxu0 %v2384_v0 }
  0x3c   : > { %2081 = vmatpush3.xpose.msk.msra.mxu1 %vm443_vm1, %v414_v10 }
  0x3d   : > { %2082 = vmatprep.subr.mxu1 %v2384_v0  ;;  %2044 = vmatpush3.xpose.msk.msra.mxu0 %vm443_vm1, %v399_v31  ;;  %v1827_v31 = vld [vmem:[%s2494_s17 + $0xb0] sm:$0xff] }
  0x3e   : > { %2045 = vmatprep.subr.mxu0 %v2384_v0 }
  0x40   : > { %2083 = vmatpush3.xpose.msk.msra.mxu1 %vm443_vm1, %v413_v11 }
  0x41   : > { %2084 = vmatprep.subr.mxu1 %v2384_v0  ;;  %2046 = vmatpush3.xpose.msk.msra.mxu0 %vm443_vm1, %v398_v32  ;;  %v1826_v32 = vld [vmem:[%s2494_s17 + $0xa8] sm:$0xff] }
  0x42   : > { %2047 = vmatprep.subr.mxu0 %v2384_v0 }
  0x44   : > { %2085 = vmatpush3.xpose.msk.msra.mxu1 %vm443_vm1, %v412_v12 }
  0x45   : > { %2086 = vmatprep.subr.mxu1 %v2384_v0  ;;  %2048 = vmatpush3.xpose.msk.msra.mxu0 %vm443_vm1, %v397_v33  ;;  %v1825_v33 = vld [vmem:[%s2494_s17 + $0xa0] sm:$0xff] }
  0x46   : > { %2049 = vmatprep.subr.mxu0 %v2384_v0 }
  0x48   : > { %2087 = vmatpush3.xpose.msk.msra.mxu1 %vm443_vm1, %v411_v13 }
  0x49   : > { %2088 = vmatprep.subr.mxu1 %v2384_v0  ;;  %2050 = vmatpush3.xpose.msk.msra.mxu0 %vm443_vm1, %v396_v34  ;;  %v1824_v34 = vld [vmem:[%s2494_s17 + $0x98] sm:$0xff] }
  0x4a   : > { %2051 = vmatprep.subr.mxu0 %v2384_v0 }
  0x4c   : > { %2089 = vmatpush3.xpose.msk.msra.mxu1 %vm443_vm1, %v410_v14 }
  0x4d   : > { %2090 = vmatprep.subr.mxu1 %v2384_v0  ;;  %2052 = vmatpush3.xpose.msk.msra.mxu0 %vm443_vm1, %v395_v35  ;;  %v1823_v35 = vld [vmem:[%s2494_s17 + $0x90] sm:$0xff] }
  0x4e   : > { %2053 = vmatprep.subr.mxu0 %v2384_v0 }
  0x50   : > { %2091 = vmatpush3.xpose.msk.msra.mxu1 %vm443_vm1, %v409_v15  ;;  %v1836_v15 = vld [vmem:[%s2494_s17 + $0xf8] sm:$0xff] }
  0x51   : > { %2092 = vmatprep.subr.mxu1 %v2384_v0  ;;  %2054 = vmatpush3.xpose.msk.msra.mxu0 %vm443_vm1, %v394_v36  ;;  %v1822_v36 = vld [vmem:[%s2494_s17 + $0x88] sm:$0xff] }
  0x52   : > { %2055 = vmatprep.subr.mxu0 %v2384_v0 }
  0x54   : > { %2093 = vmatpush3.xpose.msk.msra.mxu1 %vm443_vm1, %v408_v16 }
  0x55   : > { %2132 = vmatprep.subr.mxu1 %v2384_v0  ;;  %2056 = vmatpush3.xpose.msk.msra.mxu0 %vm443_vm1, %v393_v37  ;;  %v1821_v37 = vld [vmem:[%s2494_s17 + $0x80] sm:$0xff] }
  0x56   : > { %2057 = vmatprep.subr.mxu0 %v2384_v0 }
  0x57   : > { %2095 = vmatmul.mubr.msk.f32.vlgmr.msra.gmra.mxu1 %vm443_vm1, %v441_v17 }
  0x58   : > { %2134 = vmatprep.mubr.msk.f32.mxu1 %vm2385_vm0, %v2384_v0 }
  0x59   : > { %2058 = vmatpush3.xpose.msk.msra.mxu0 %vm443_vm1, %v392_v38  ;;  %v1854_v38 = vld [vmem:[%s2549_s21 + $0x8] sm:$0xff] }
  0x5a   : > { %2097 = vmatprep.subr.mxu0 %v2384_v0 }
  0x5c   : > { %2060 = vmatmul.mubr.msk.f32.vlgmr.msra.gmra.mxu0 %vm443_vm1, %v440_v39 }
  0x5d   : > { %2098 = vmatpush3.msra.mxu0 %v439_v40  ;;  %2129 = vmatprep.mubr.msk.f32.mxu0 %vm2385_vm0, %v2384_v0 }
  0x5e   : > { %2099 = vmatprep.subr.mxu0 %v2384_v0 }
  0x5f   : > { %2100 = vmatpush3.msra.mxu0 %v438_v41 }
  0x60   : > { %2101 = vmatprep.subr.mxu0 %v2384_v0 }
  0x61   : > { %2102 = vmatpush3.msra.mxu0 %v437_v42 }
  0x62   : > { %2103 = vmatprep.subr.mxu0 %v2384_v0 }
  0x63   : > { %2104 = vmatpush3.msra.mxu0 %v436_v43 }
  0x64   : > { %2105 = vmatprep.subr.mxu0 %v2384_v0 }
  0x65   : > { %2106 = vmatpush3.msra.mxu0 %v435_v44 }
  0x66   : > { %2107 = vmatprep.subr.mxu0 %v2384_v0 }
  0x67   : > { %2108 = vmatpush3.msra.mxu0 %v434_v45 }
  0x68   : > { %2109 = vmatprep.subr.mxu0 %v2384_v0 }
  0x69   : > { %2110 = vmatpush3.msra.mxu0 %v433_v46 }
  0x6a   : > { %2111 = vmatprep.subr.mxu0 %v2384_v0 }
  0x6b   : > { %2112 = vmatpush3.msra.mxu0 %v432_v47 }
  0x6c   : > { %2113 = vmatprep.subr.mxu0 %v2384_v0 }
  0x6d   : > { %2114 = vmatpush3.msra.mxu0 %v431_v52 }
  0x6e   : > { %2115 = vmatprep.subr.mxu0 %v2384_v0 }
  0x6f   : > { %2116 = vmatpush3.msra.mxu0 %v430_v53  ;;  %v1817_v53 = vld [vmem:[%s2571_s15 + $0xe0] sm:$0xff] }
  0x70   : > { %2117 = vmatprep.subr.mxu0 %v2384_v0 }
  0x71   : > { %2118 = vmatpush3.msra.mxu0 %v429_v54  ;;  %v1816_v54 = vld [vmem:[%s2571_s15 + $0xd8] sm:$0xff] }
  0x72   : > { %2119 = vmatprep.subr.mxu0 %v2384_v0 }
  0x73   : > { %2120 = vmatpush3.msra.mxu0 %v428_v55  ;;  %v1815_v55 = vld [vmem:[%s2571_s15 + $0xd0] sm:$0xff] }
  0x74   : > { %2121 = vmatprep.subr.mxu0 %v2384_v0 }
  0x75   : > { %2122 = vmatpush3.msra.mxu0 %v427_v56  ;;  %v1814_v56 = vld [vmem:[%s2571_s15 + $0xc8] sm:$0xff] }
  0x76   : > { %2123 = vmatprep.subr.mxu0 %v2384_v0 }
  0x77   : > { %2124 = vmatpush3.msra.mxu0 %v426_v57  ;;  %v1813_v57 = vld [vmem:[%s2571_s15 + $0xc0] sm:$0xff] }
  0x78   : > { %2125 = vmatprep.subr.mxu0 %v2384_v0 }
  0x79   : > { %2126 = vmatpush3.msra.mxu0 %v425_v58  ;;  %v1812_v58 = vld [vmem:[%s2571_s15 + $0xb8] sm:$0xff] }
  0x7a   : > { %2127 = vmatprep.subr.mxu0 %v2384_v0 }
  0x7b   : > { %2128 = vmatpush3.msra.mxu0 %v424_v59  ;;  %v1811_v59 = vld [vmem:[%s2571_s15 + $0xb0] sm:$0xff] }
  0x7c   : > { %2180 = vmatprep.subr.mxu0 %v2384_v0 }
 0x117   : > { %v700_v18 = vpop.f32.mrf.mxu1 }
 0x118   : > { %v704_v20 = vmul.f32 0.17677669, %v700_v18  ;;  %v1835_v18 = vld [vmem:[%s2494_s17 + $0xf0] sm:$0xff] }
 0x119   : > { %v2096_v21 = vpop.f32.mrf.mxu1 }
 0x11a   : > { %v2564_v22 = vadd.f32 %v2561_v19, %v704_v20  ;;  %v1834_v21 = vld [vmem:[%s2494_s17 + $0xe8] sm:$0xff] }
 0x11c   : > { %712 = vmax.xlane.f32.xlu0 %v2564_v22  ;;  %v561_v60 = vpop.f32.mrf.mxu0 }
 0x11d   : > { %v565_v61 = vmul.f32 0.17677669, %v561_v60  ;;  %v1810_v60 = vld [vmem:[%s2571_s15 + $0xa8] sm:$0xff] }
 0x11e   : > { %v2061_v62 = vpop.f32.mrf.mxu0 }
 0x11f   : > { %v566_v63 = vrot.slane %v565_v61, 4  ;;  %v1808_v62 = vld [vmem:[%s2571_s15 + $0x98] sm:$0xff] }
 0x121   : > { %v567_v1 = vmax.f32 %v565_v61, %v566_v63  ;;  %v1807_v63 = vld [vmem:[%s2571_s15 + $0x90] sm:$0xff] }
 0x123   : > { %v568_v2 = vrot.slane %v567_v1, 2 }
 0x125   : > { %v569_v3 = vmax.f32 %v567_v1, %v568_v2  ;;  %v1806_v1 = vld [vmem:[%s2571_s15 + $0x88] sm:$0xff]  ;;  %v1805_v2 = vld [vmem:[%s2571_s15 + $0x80] sm:$0xff] }
 0x127   : > { %v570_v4 = vrot.slane %v569_v3, 1 }
 0x129   : > { %v571_v5 = vmax.f32 %v569_v3, %v570_v4  ;;  %v1853_v3 = vld [vmem:[%s2623_s19 + $0x8] sm:$0xff]  ;;  %v1852_v4 = vld [vmem:[%s2629_s23 + $0xf8] sm:$0xff] }
 0x12b   : > { %v572_v6 = vsub.f32 %v565_v61, %v571_v5  ;;  %v1809_v61 = vld [vmem:[%s2571_s15 + $0xa0] sm:$0xff]  ;;  %v1851_v5 = vld [vmem:[%s2629_s23 + $0xf0] sm:$0xff] }
 0x12d   : > { %v573_v7 = vmul.f32 1.442695, %v572_v6  ;;  %v1850_v6 = vld [vmem:[%s2629_s23 + $0xe8] sm:$0xff] }
 0x1a5   : > { %v713_v48 = vpop.xlane.xlu0 %712 }
 0x1a6   : > { %v714_v49 = vsub.f32 %v2564_v22, %v713_v48  ;;  %v1833_v22 = vld [vmem:[%s2494_s17 + $0xe0] sm:$0xff]  ;;  %v1820_v48 = vld [vmem:[%s2571_s15 + $0xf8] sm:$0xff]  ;;  %s355_s17 = sand.u32 1, %s2374_s25  }
 0x1a7   : > { %s1752_s18 = sshll.u32 %s355_s17, 6  ;;  %s2857_s20 = scalar_lea.sflag [#allocation3], %s355_s17 }
 0x1a8   : > { %v715_v50 = vmul.f32 1.442695, %v714_v49  ;;  %s2830_s21 = scalar_lea.vmem [#allocation2], %s1752_s18 }
 0x1a9   : > { %s1617_s9 = sshll.u32 %s2830_s21, 4  ;;  %s2846_s9 = int_to_ptr.vmem [resolvable:$true] %s1617_s9 }
 0x1aa   : > { %2306 = vpow2.f32 %v715_v50  ;;  %v1819_v50 = vld [vmem:[%s2571_s15 + $0xf0] sm:$0xff]  ;;  %s2322_s22 = scalar_lea.vmem %s2846_s9, 1024 }
 0x1ab   : > { %2308 = vpow2.f32 %v573_v7  ;;  %v1849_v7 = vld [vmem:[%s2629_s23 + $0xe0] sm:$0xff]  ;;  %p2323_p11 = scmp.ne.s32.totalorder %s2846_s9, %s2322_s22 }
 0x1ad   : > { %p2324_p12 = pnand %p2323_p11, %p2467_p5 }
 0x1af   : > { %p2325_p13 = pneg %p2324_p12 }
 0x1b7   : > { %v2307_v51 = vpop.eup %2306 }
 0x1b8   : > { %717 = vadd.xlane.f32.xlu0 %v2307_v51  ;;  %v2309_v9 = vpop.eup %2308 }
 0x1b9   : > { %v575_v10 = vrot.slane %v2309_v9, 4 }
 0x1bb   : > { %v576_v11 = vadd.f32 %v2309_v9, %v575_v10  ;;  %v1846_v10 = vld [vmem:[%s2629_s23 + $0xc8] sm:$0xff] }
 0x1bd   : > { %v577_v13 = vrot.slane %v576_v11, 2 }
 0x1bf   : > { %v578_v16 = vadd.f32 %v577_v13, %v576_v11 }
 0x1c1   : > { %v579_v17 = vrot.slane %v578_v16, 1 }
 0x1c3   : > { %v580_v20 = vadd.f32 %v579_v17, %v578_v16  ;;  %v1844_v16 = vld [vmem:[%s2629_s23 + $0xb8] sm:$0xff]  ;;  %v1843_v17 = vld [vmem:[%s2629_s23 + $0xb0] sm:$0xff] }
 0x241   : > { %v718_v8 = vpop.xlane.xlu0 %717 }
 0x242   : > { %2310 = vrcp.f32 %v718_v8  ;;  %v1848_v8 = vld [vmem:[%s2629_s23 + $0xd8] sm:$0xff] }
 0x243   : > { %2312 = vrcp.f32 %v580_v20  ;;  %v1841_v20 = vld [vmem:[%s2629_s23 + $0xa0] sm:$0xff] }
 0x24f   : > { %v2311_v12 = vpop.eup %2310 }
 0x250   : > { %v720_v14 = vmul.f32 %v2311_v12, %v2307_v51  ;;  %v2313_v24 = vpop.eup %2312  ;;  %v1845_v12 = vld [vmem:[%s2629_s23 + $0xc0] sm:$0xff] }
 0x251   : > { %v582_v26 = vmul.f32 %v2313_v24, %v2309_v9  ;;  %v1847_v9 = vld [vmem:[%s2629_s23 + $0xd0] sm:$0xff]  ;;  %v1837_v24 = vld [vmem:[%s2629_s23 + $0x80] sm:$0xff] }
 0x252   : > { %2130 = vmatmul.mubr.f32.vlgmr.msra.gmra.mxu0 %v720_v14 }
 0x253   : > { %2181 = vmatpush3.xpose.msk.msra.mxu0 %vm443_vm1, %v1836_v15  ;;  %2212 = vmatprep.mubr.msk.f32.mxu0 %vm2385_vm0, %v2384_v0 }
 0x254   : > { %2182 = vmatprep.subr.mxu0 %v2384_v0  ;;  %2133 = vmatpush3.msra.mxu1 %v582_v26 }
 0x255   : > { %2135 = vmatmul.mubr.msk.f32.vlgmr.msra.gmra.mxu1 %vm791_vm2, %v442_v27 }
 0x257   : > { %2183 = vmatpush3.xpose.msk.msra.mxu0 %vm443_vm1, %v1835_v18  ;;  %v1842_v18 = vld [vmem:[%s2629_s23 + $0xa8] sm:$0xff] }
 0x258   : > { %2184 = vmatprep.subr.mxu0 %v2384_v0 }
 0x25b   : > { %2185 = vmatpush3.xpose.msk.msra.mxu0 %vm443_vm1, %v1834_v21  ;;  %v1840_v21 = vld [vmem:[%s2629_s23 + $0x98] sm:$0xff] }
 0x25c   : > { %2186 = vmatprep.subr.mxu0 %v2384_v0 }
 0x25f   : > { %2187 = vmatpush3.xpose.msk.msra.mxu0 %vm443_vm1, %v1833_v22  ;;  %v1839_v22 = vld [vmem:[%s2629_s23 + $0x90] sm:$0xff] }
 0x260   : > { %2188 = vmatprep.subr.mxu0 %v2384_v0 }
 0x263   : > { %2189 = vmatpush3.xpose.msk.msra.mxu0 %vm443_vm1, %v1832_v23  ;;  %v1838_v23 = vld [vmem:[%s2629_s23 + $0x88] sm:$0xff] }
 0x264   : > { %2190 = vmatprep.subr.mxu0 %v2384_v0 }
 0x267   : > { %2191 = vmatpush3.xpose.msk.msra.mxu0 %vm443_vm1, %v1831_v25 }
 0x268   : > { %2192 = vmatprep.subr.mxu0 %v2384_v0 }
 0x26b   : > { %2193 = vmatpush3.xpose.msk.msra.mxu0 %vm443_vm1, %v1830_v28 }
 0x26c   : > { %2194 = vmatprep.subr.mxu0 %v2384_v0 }
 0x26f   : > { %2195 = vmatpush3.xpose.msk.msra.mxu0 %vm443_vm1, %v1829_v29 }
 0x270   : > { %2196 = vmatprep.subr.mxu0 %v2384_v0 }
 0x273   : > { %2197 = vmatpush3.xpose.msk.msra.mxu0 %vm443_vm1, %v1828_v30 }
 0x274   : > { %2198 = vmatprep.subr.mxu0 %v2384_v0 }
 0x277   : > { %2199 = vmatpush3.xpose.msk.msra.mxu0 %vm443_vm1, %v1827_v31 }
 0x278   : > { %2200 = vmatprep.subr.mxu0 %v2384_v0 }
 0x27b   : > { %2201 = vmatpush3.xpose.msk.msra.mxu0 %vm443_vm1, %v1826_v32 }
 0x27c   : > { %2202 = vmatprep.subr.mxu0 %v2384_v0 }
 0x27f   : > { %2203 = vmatpush3.xpose.msk.msra.mxu0 %vm443_vm1, %v1825_v33 }
 0x280   : > { %2204 = vmatprep.subr.mxu0 %v2384_v0 }
 0x283   : > { %2205 = vmatpush3.xpose.msk.msra.mxu0 %vm443_vm1, %v1824_v34 }
 0x284   : > { %2206 = vmatprep.subr.mxu0 %v2384_v0 }
 0x287   : > { %2207 = vmatpush3.xpose.msk.msra.mxu0 %vm443_vm1, %v1823_v35 }
 0x288   : > { %2208 = vmatprep.subr.mxu0 %v2384_v0 }
 0x28b   : > { %2209 = vmatpush3.xpose.msk.msra.mxu0 %vm443_vm1, %v1822_v36 }
 0x28c   : > { %2210 = vmatprep.subr.mxu0 %v2384_v0 }
 0x28f   : > { %2211 = vmatpush3.xpose.msk.msra.mxu0 %vm443_vm1, %v1821_v37 }
 0x290   : > { %2250 = vmatprep.subr.mxu0 %v2384_v0 }
 0x292   : > { %2213 = vmatmul.mubr.msk.f32.vlgmr.msra.gmra.mxu0 %vm443_vm1, %v1854_v38 }
 0x293   : > { %2252 = vmatprep.mubr.msk.f32.mxu0 %vm2385_vm0, %v2384_v0 }
 0x312   : > { %v787_v39 = vpop.f32.mrf.mxu0 }
 0x313   : > { %865 = vxpose.xlu1.b32.start.end [1/1] (short) (narrow) %v787_v39, 32 }
 0x314   : > { %v2131_v40 = vpop.f32.mrf.mxu0 }
 0x315   : > { %v861_v41 = vpop.f32.mrf.mxu1 }
 0x316   : > { %2137 = vmatprep.subr.mxu1 %v861_v41 }
 0x317   : > { %2138 = vmatpush3.msra.mxu1 %v861_v41  ;;  %v2136_v42 = vpop.f32.mrf.mxu1 }
 0x318   : > { %2145 = vmatprep.subr.mxu1 %v2384_v0 }
 0x352   : > { %v1311_v43 = vpop.f32.mrf.mxu0 }
 0x353   : > { %v1315_v44 = vmul.f32 0.17677669, %v1311_v43 }
 0x354   : > { %v2214_v45 = vpop.f32.mrf.mxu0 }
 0x355   : > { %v2734_v46 = vadd.f32 %v2561_v19, %v1315_v44  ;;  %v1818_v19 = vld [vmem:[%s2571_s15 + $0xe8] sm:$0xff]  ;;  %s1910_s15 = sshll.u32 %s2450_s28, 10  ;;  %s2386_s28 = smov [#allocation2]  }
 0x356   : > { %s2851_s19 = scalar_lea.hbm %s2904_s7, %s1910_s15  ;;  %s2326_s23 = sshll.u32 %s2386_s28, 4  ;;  %s2327_s23 = int_to_ptr.vmem [resolvable:$false] %s2326_s23 }
 0x357   : > { %1317 = vmax.xlane.f32.xlu1 %v2734_v46  ;;  %s2328_s14 = scalar_lea.vmem %s2327_s23, 2048  ;;  %p2329_p0 = scmp.lt.s32.totalorder %s2846_s9, %s2327_s23 }
 0x358   : > { %p2330_p1 = scmp.lt.s32.totalorder %s2328_s14, %s2322_s22 }
 0x35a   : > { %p2331_p2 = por %p2330_p1, %p2329_p0 }
 0x35c   : > { %p2332_p3 = pnand %p2331_p2, %p2325_p13 }
 0x38f   : > { %v881_v47 = vpop.trf.xlu1 }
 0x390   : > { %2139 = vmatprep.mubr.msk.f32.mxu1 %vm791_vm2, %v881_v47 }
 0x393   : > { %v882_v49 = vpop.trf.xlu1 }
 0x394   : > { %2140 = vmatmul.mubr.msk.f32.vlgmr.msra.gmra.mxu1 %vm791_vm2, %v882_v49 }
 0x395   : > { %2146 = vmatpush3.xpose.msk.msra.mxu1 %vm443_vm1, %v1820_v48 }
 0x396   : > { %2147 = vmatprep.subr.mxu1 %v2384_v0 }
 0x397   : > { %v883_v51 = vpop.trf.xlu1 }
 0x398   : > { %2142 = vmatprep.mubr.msk.f32.mxu1 %vm791_vm2, %v883_v51  ;;  %v1855_v51 = vld [vmem:[%s2689_s8 + $0x8] sm:$0xff] }
 0x399   : > { %2148 = vmatpush3.xpose.msk.msra.mxu1 %vm443_vm1, %v1819_v50 }
 0x39a   : > { %2149 = vmatprep.subr.mxu1 %v2384_v0 }
 0x39b   : > { %v884_v52 = vpop.trf.xlu1 }
 0x39c   : > { %2143 = vmatmul.mubr.msk.f32.gmra.mxu1 %vm791_vm2, %v884_v52 }
 0x39d   : > { %2150 = vmatpush3.xpose.msk.msra.mxu1 %vm443_vm1, %v1818_v19  ;;  %2177 = vmatprep.mubr.msk.f32.mxu1 %vm2385_vm0, %v2384_v0 }
 0x39e   : > { %2151 = vmatprep.subr.mxu1 %v2384_v0 }
 0x3a1   : > { %2152 = vmatpush3.xpose.msk.msra.mxu1 %vm443_vm1, %v1817_v53 }
 0x3a2   : > { %2153 = vmatprep.subr.mxu1 %v2384_v0 }
 0x3a5   : > { %2154 = vmatpush3.xpose.msk.msra.mxu1 %vm443_vm1, %v1816_v54 }
 0x3a6   : > { %2155 = vmatprep.subr.mxu1 %v2384_v0 }
 0x3a9   : > { %2156 = vmatpush3.xpose.msk.msra.mxu1 %vm443_vm1, %v1815_v55 }
 0x3aa   : > { %2157 = vmatprep.subr.mxu1 %v2384_v0 }
 0x3ad   : > { %2158 = vmatpush3.xpose.msk.msra.mxu1 %vm443_vm1, %v1814_v56 }
 0x3ae   : > { %2159 = vmatprep.subr.mxu1 %v2384_v0 }
 0x3b1   : > { %2160 = vmatpush3.xpose.msk.msra.mxu1 %vm443_vm1, %v1813_v57 }
 0x3b2   : > { %2161 = vmatprep.subr.mxu1 %v2384_v0 }
 0x3b5   : > { %2162 = vmatpush3.xpose.msk.msra.mxu1 %vm443_vm1, %v1812_v58 }
 0x3b6   : > { %2163 = vmatprep.subr.mxu1 %v2384_v0 }
 0x3b9   : > { %2164 = vmatpush3.xpose.msk.msra.mxu1 %vm443_vm1, %v1811_v59 }
 0x3ba   : > { %2165 = vmatprep.subr.mxu1 %v2384_v0 }
 0x3bd   : > { %2166 = vmatpush3.xpose.msk.msra.mxu1 %vm443_vm1, %v1810_v60 }
 0x3be   : > { %2167 = vmatprep.subr.mxu1 %v2384_v0 }
 0x3c1   : > { %2168 = vmatpush3.xpose.msk.msra.mxu1 %vm443_vm1, %v1809_v61 }
 0x3c2   : > { %2169 = vmatprep.subr.mxu1 %v2384_v0 }
 0x3c5   : > { %2170 = vmatpush3.xpose.msk.msra.mxu1 %vm443_vm1, %v1808_v62 }
 0x3c6   : > { %2171 = vmatprep.subr.mxu1 %v2384_v0 }
 0x3c9   : > { %2172 = vmatpush3.xpose.msk.msra.mxu1 %vm443_vm1, %v1807_v63 }
 0x3ca   : > { %2173 = vmatprep.subr.mxu1 %v2384_v0 }
 0x3cd   : > { %2174 = vmatpush3.xpose.msk.msra.mxu1 %vm443_vm1, %v1806_v1 }
 0x3ce   : > { %2175 = vmatprep.subr.mxu1 %v2384_v0 }
 0x3d1   : > { %2176 = vmatpush3.xpose.msk.msra.mxu1 %vm443_vm1, %v1805_v2 }
 0x3d2   : > { %2215 = vmatprep.subr.mxu1 %v2384_v0 }
 0x3d4   : > { %2178 = vmatmul.mubr.msk.f32.vlgmr.msra.gmra.mxu1 %vm443_vm1, %v1853_v3 }
 0x3d5   : > { %2216 = vmatpush3.msra.mxu1 %v1852_v4  ;;  %2247 = vmatprep.mubr.msk.f32.mxu1 %vm2385_vm0, %v2384_v0 }
 0x3d6   : > { %2217 = vmatprep.subr.mxu1 %v2384_v0 }
 0x3d7   : > { %2218 = vmatpush3.msra.mxu1 %v1851_v5 }
 0x3d8   : > { %2219 = vmatprep.subr.mxu1 %v2384_v0 }
 0x3d9   : > { %2220 = vmatpush3.msra.mxu1 %v1850_v6 }
 0x3da   : > { %2221 = vmatprep.subr.mxu1 %v2384_v0 }
 0x3db   : > { %2222 = vmatpush3.msra.mxu1 %v1849_v7 }
 0x3dc   : > { %2223 = vmatprep.subr.mxu1 %v2384_v0 }
 0x3dd   : > { %2224 = vmatpush3.msra.mxu1 %v1848_v8 }
 0x3de   : > { %2225 = vmatprep.subr.mxu1 %v2384_v0 }
 0x3df   : > { %2226 = vmatpush3.msra.mxu1 %v1847_v9 }
 0x3e0   : > { %v1318_v11 = vpop.xlane.xlu1 %1317  ;;  %2227 = vmatprep.subr.mxu1 %v2384_v0 }
 0x3e1   : > { %v1319_v13 = vsub.f32 %v2734_v46, %v1318_v11  ;;  %2228 = vmatpush3.msra.mxu1 %v1846_v10 }
 0x3e2   : > { %2229 = vmatprep.subr.mxu1 %v2384_v0 }
 0x3e3   : > { %v1320_v14 = vmul.f32 1.442695, %v1319_v13  ;;  %2230 = vmatpush3.msra.mxu1 %v1845_v12 }
 0x3e4   : > { %2231 = vmatprep.subr.mxu1 %v2384_v0 }
 0x3e5   : > { %2314 = vpow2.f32 %v1320_v14  ;;  %2232 = vmatpush3.msra.mxu1 %v1844_v16 }
 0x3e6   : > { %2233 = vmatprep.subr.mxu1 %v2384_v0 }
 0x3e7   : > { %2234 = vmatpush3.msra.mxu1 %v1843_v17 }
 0x3e8   : > { %2235 = vmatprep.subr.mxu1 %v2384_v0 }
 0x3e9   : > { %2236 = vmatpush3.msra.mxu1 %v1842_v18 }
 0x3ea   : > { %2237 = vmatprep.subr.mxu1 %v2384_v0 }
 0x3eb   : > { %2238 = vmatpush3.msra.mxu1 %v1841_v20 }
 0x3ec   : > { %2239 = vmatprep.subr.mxu1 %v2384_v0 }
 0x3ed   : > { %2240 = vmatpush3.msra.mxu1 %v1840_v21 }
 0x3ee   : > { %2241 = vmatprep.subr.mxu1 %v2384_v0 }
 0x3ef   : > { %2242 = vmatpush3.msra.mxu1 %v1839_v22 }
 0x3f0   : > { %2243 = vmatprep.subr.mxu1 %v2384_v0 }
 0x3f1   : > { %2244 = vmatpush3.msra.mxu1 %v1838_v23 }
 0x3f2   : > { %v2315_v15 = vpop.eup %2314  ;;  %2245 = vmatprep.subr.mxu1 %v2384_v0 }
 0x3f3   : > { %1322 = vadd.xlane.f32.xlu0 %v2315_v15  ;;  %2246 = vmatpush3.msra.mxu1 %v1837_v24 }
 0x454   : > { %v2141_v25 = vpop.f32.mrf.mxu1 }
 0x455   : > { %995 = vst [vmem:[%s2830_s21 + $0x8] sm:$0xff] %v2141_v25 }
 0x456   : > { %v975_v26 = vpop.f32.mrf.mxu1 }
 0x457   : > { %994 = vst [vmem:[%s2830_s21] sm:$0xff] %v975_v26 }
 0x45c   : > { %v2144_v27 = vpop.f32.mrf.mxu1 }
 0x45d   : > { %997 = vst [vmem:[%s2830_s21 + $0x18] sm:$0xff] %v2144_v27 }
 0x45e   : > { %v985_v28 = vpop.f32.mrf.mxu1 }
 0x45f   : > { %996 = vst [vmem:[%s2830_s21 + $0x10] sm:$0xff] %v985_v28 }
 0x47c   : > { %v1323_v29 = vpop.xlane.xlu0 %1322 }
 0x47d   : > { %2316 = vrcp.f32 %v1323_v29 }
 0x48a   : > { %v2317_v0 = vpop.eup %2316 }
 0x48b   : > { %v1325_v30 = vmul.f32 %v2317_v0, %v2315_v15 }
 0x48d   : > { %2248 = vmatmul.mubr.f32.vlgmr.msra.gmra.mxu1 %v1325_v30 }
 0x494   : > { %v1172_v31 = vpop.f32.mrf.mxu1 }
 0x495   : > { %v1176_v32 = vmul.f32 0.17677669, %v1172_v31 }
 0x496   : > { %v2179_v33 = vpop.f32.mrf.mxu1 }
 0x497   : > { %v1177_v34 = vrot.slane %v1176_v32, 4 }
 0x499   : > { %v1178_v35 = vmax.f32 %v1176_v32, %v1177_v34 }
 0x49b   : > { %v1179_v36 = vrot.slane %v1178_v35, 2 }
 0x49d   : > { %v1180_v37 = vmax.f32 %v1178_v35, %v1179_v36 }
 0x49f   : > { %v1181_v38 = vrot.slane %v1180_v37, 1 }
 0x4a1   : > { %v1182_v39 = vmax.f32 %v1180_v37, %v1181_v38 }
 0x4a3   : > { %v1183_v40 = vsub.f32 %v1176_v32, %v1182_v39 }
 0x4a5   : > { %v1184_v41 = vmul.f32 1.442695, %v1183_v40 }
 0x4a7   : > { %2318 = vpow2.f32 %v1184_v41 }
 0x4b4   : > { %v2319_v42 = vpop.eup %2318 }
 0x4b5   : > { %v1186_v43 = vrot.slane %v2319_v42, 4 }
 0x4b7   : > { %v1187_v44 = vadd.f32 %v2319_v42, %v1186_v43 }
 0x4b9   : > { %v1188_v45 = vrot.slane %v1187_v44, 2 }
 0x4bb   : > { %v1189_v46 = vadd.f32 %v1188_v45, %v1187_v44 }
 0x4bd   : > { %v1190_v47 = vrot.slane %v1189_v46, 1 }
 0x4bf   : > { %v1191_v48 = vadd.f32 %v1190_v47, %v1189_v46 }
 0x4c1   : > { %2320 = vrcp.f32 %v1191_v48 }
 0x4ce   : > { %v2321_v49 = vpop.eup %2320 }
 0x4cf   : > { %v1193_v50 = vmul.f32 %v2321_v49, %v2319_v42 }
 0x4d1   : > { %2251 = vmatpush3.msra.mxu0 %v1193_v50 }
 0x4d2   : > { %2253 = vmatmul.mubr.msk.f32.vlgmr.msra.gmra.mxu0 %vm791_vm2, %v1855_v51 }
 0x54d   : > { %v1392_v19 = vpop.f32.mrf.mxu1 }
 0x54e   : > { %1469 = vxpose.xlu0.b32.start.end [1/1] (short) (narrow) %v1392_v19, 32 }
 0x54f   : > { %v2249_v52 = vpop.f32.mrf.mxu1 }
 0x592   : > { %v1465_v53 = vpop.f32.mrf.mxu0 }
 0x593   : > { %2255 = vmatprep.subr.mxu0 %v1465_v53 }
 0x594   : > { %v2254_v54 = vpop.f32.mrf.mxu0  ;;  %2256 = vmatpush3.msra.mxu0 %v1465_v53 }
 0x5ca   : > { %v1485_v55 = vpop.trf.xlu0 }
 0x5cb   : > { %2257 = vmatprep.mubr.msk.f32.mxu0 %vm791_vm2, %v1485_v55 }
 0x5ce   : > { %v1486_v56 = vpop.trf.xlu0 }
 0x5cf   : > { %2258 = vmatmul.mubr.msk.f32.vlgmr.msra.gmra.mxu0 %vm791_vm2, %v1486_v56 }
 0x5d2   : > { %v1487_v57 = vpop.trf.xlu0 }
 0x5d3   : > { %2260 = vmatprep.mubr.msk.f32.mxu0 %vm791_vm2, %v1487_v57 }
 0x5d6   : > { %v1488_v58 = vpop.trf.xlu0 }
 0x5d7   : > { %2261 = vmatmul.mubr.msk.f32.gmra.mxu0 %vm791_vm2, %v1488_v58 }
 0x68f   : > { %v2259_v59 = vpop.f32.mrf.mxu0 }
 0x690   : > { %1896 = vst [vmem:[%s2830_s21 + $0x28] sm:$0xff] %v2259_v59 }
 0x691   : > { %v1579_v60 = vpop.f32.mrf.mxu0 }
 0x692   : > { %1895 = vst [vmem:[%s2830_s21 + $0x20] sm:$0xff] %v1579_v60 }
 0x697   : > { %v2262_v61 = vpop.f32.mrf.mxu0 }
 0x698   : > { %1898 = vst [vmem:[%s2830_s21 + $0x38] sm:$0xff] %v2262_v61 }
 0x699   : > { %v1589_v62 = vpop.f32.mrf.mxu0 }
 0x69a   : > { %1897 = vst [vmem:[%s2830_s21 + $0x30] sm:$0xff] %v1589_v62 }
 0x69b   : > { %2335 = shalt.err (!%p2332_p3)
}
 0x69c   : > { %s2336_s29 = scalar_lea.hbm %s2851_s19, 1024  ;;  %s2340_s18 = scalar_lea.hbm %s2904_s7, 2048 }
 0x69d   : > { %p2337_p4 = scmp.ne.s32.totalorder %s2851_s19, %s2336_s29  ;;  %p2341_p9 = scmp.lt.s32.totalorder %s2851_s19, %s2904_s7 }
 0x69e   : > { %p2342_p10 = scmp.lt.s32.totalorder %s2340_s18, %s2336_s29 }
 0x69f   : > { %p2338_p7 = pnand %p2337_p4, %p2467_p5 }
 0x6a0   : > { %p2343_p11 = por %p2342_p10, %p2341_p9 }
 0x6a1   : > { %p2339_p8 = pneg %p2338_p7 }
 0x6a3   : > { %p2344_p12 = pnand %p2343_p11, %p2339_p8 }
 0x6a5   : > { %2347 = shalt.err (!%p2344_p12)
}
 0x6a6   : > { %s2387_s13 = smov 128   ;;  %s2388_s16 = smov 8  }
 0x6a7   : > { %2263 = dma.vmem_to_hbm [thread:$0]  (%p2467_p5), %s2846_s9, 1024, %s2851_s19, %s2857_s20, %s2387_s13, %s2387_s13, %s2388_s16  }
 0x6a8 PF: > { %p2269_p13 = scmp.ge.s32.totalorder %s2382_s27, 2  ;;  %s1632_s22 = sand.u32 1, %s2370_s24  }
 0x6a9   : > { %s1633_s28 = scalar_lea.sflag [#allocation3], %s1632_s22 }
 0x6aa   : > { %p2266_p0 = pnand %p2269_p13, %p2471_p6 }
 0x6ac   : > { %p2267_p1 = pneg %p2266_p0 }
 0x6ae   : > { %2365 = dma.done.wait (%p2267_p1), %s1633_s28, 1024  }
 0x6af   : > { %2367 = vsyncadd (%p2267_p1), %s1633_s28, 4294966272  ;;  %p17_p2 = scmp.ge.s32.totalorder %s2454_s30, 4   ;;  %s2907_s24 = smov %s2374_s25 }
 0x6b0   : > { %s2908_s25 = smov %s2378_s26  ;;  %s2909_s26 = smov %s2465_s10 }
 0x6b1   : > { %s2910_s27 = smov %s2454_s30  ;;  %19 = sbr.rel (!%p17_p2) target bundleno = 3 (0x3), region = 108 }
 0x6b6   :  { %1638 = vsyncpa [#allocation3], 1 }
 0x6b7   :  { %1640 = vsyncpa [#allocation3 + $0x1], 1 }

</bundles_post_ra>
